<compile_context>
chip_gen: v7x
topology: tpu7x:2x2x1
jax: 0.10.0
libtpu: 0.0.40
codegen_flags: <defaults>
</compile_context>

<pallas_src>
import jax
import jax.numpy as jnp
from jax import lax
from jax.experimental import pallas as pl
from jax.experimental.pallas import tpu as pltpu

LN_EPS = 1e-5          # torch.nn.LayerNorm default
NUM_HEADS = 2          # only needed by the pure-JAX reference

_TB_MAX = 2048         # batch tile upper bound (sweepable; VMEM footprint is < 4 MiB at this size)
_NT_DIMS = (((1,), (1,)), ((), ()))   # contract last dim of both operands (A @ B^T)


def _round_up(n, m):
    return ((n + m - 1) // m) * m


def _pick_batch_tile(b):
    """Batch tile: multiple of 128 lanes, <= _TB_MAX, >= 2 grid steps when batch allows (v7x)."""
    b_lane = _round_up(max(b, 1), 128)
    if b_lane <= 128:
        return 128
    if b_lane >= 2 * _TB_MAX:
        return _TB_MAX
    return _round_up((b_lane + 1) // 2, 128)


def _normalize_features(y):
    """LayerNorm core (no affine -- gamma/beta are folded into downstream weights). y: (D, TB)."""
    mu = jnp.mean(y, axis=0, keepdims=True)                       # (1, TB)
    var = jnp.mean(jnp.square(y - mu), axis=0, keepdims=True)     # (1, TB)
    return (y - mu) * lax.rsqrt(var + LN_EPS)                     # rsqrt -> EUP (free slot)


def _model_kernel(x_ref, te_ref, w2_ref, vec_ref, out_ref):
    # vec columns: 0: c1   1: c2'   2: wf'   3: bias' (broadcast fill)
    vecs = vec_ref[...]                                           # (D, 4)
    c1, c2, wf = vecs[:, 0:1], vecs[:, 1:2], vecs[:, 2:3]         # (D, 1) each
    bias = vecs[0:1, 3:4]                                         # (1, 1)

    # embedding + attention-block-1 weight, pre-folded:  z1 = T_eff^T @ x^T   -> (D, TB)
    z1 = lax.dot_general(te_ref[...], x_ref[...], _NT_DIMS,
                         preferred_element_type=jnp.float32) + c1
    n1 = _normalize_features(z1)

    # attention block 2 (LN1 affine folded into W2'):    z2 = W2'^T @ n1      -> (D, TB)
    z2 = jnp.dot(w2_ref[...], n1, preferred_element_type=jnp.float32) + c2
    n2 = _normalize_features(z2)

    # linear_final (LN2 affine folded in) as a sublane reduction -> lane-dense (1, TB) store
    out_ref[...] = jnp.sum(n2 * wf, axis=0, keepdims=True) + bias


def embedding_attention_attention_forward(inp, kparams):
    """inp: (B, length) float32 -> (B, 1, 1) float32 (matches the PyTorch output shape)."""
    te_t, w2_t, vcols = kparams
    b, length = inp.shape
    d = te_t.shape[0]

    tb = _pick_batch_tile(b)
    b_pad = _round_up(b, tb)
    if b_pad != b:
        inp = jnp.pad(inp, ((0, b_pad - b), (0, 0)))   # padded rows -> LN of constant c1 (finite), sliced off

    out = pl.pallas_call(
        _model_kernel,
        out_shape=jax.ShapeDtypeStruct((1, b_pad), jnp.float32),
        grid=(b_pad // tb,),
        in_specs=[
            pl.BlockSpec((tb, length), lambda i: (i, 0)),   # batch-tiled input (natural HBM layout)
            pl.BlockSpec((d, length), lambda i: (0, 0)),    # T_eff^T, resident
            pl.BlockSpec((d, d), lambda i: (0, 0)),         # W2'^T, resident
            pl.BlockSpec((d, 4), lambda i: (0, 0)),         # packed per-block vectors, resident
        ],
        out_specs=pl.BlockSpec((1, tb), lambda i: (0, i)),  # lane-dense output row
        compiler_params=pltpu.CompilerParams(
            dimension_semantics=("parallel",),
        ),
    )(inp, te_t, w2_t, vcols)
    return out[0, :b].reshape(b, 1, 1)


# ----------------------------- parameter construction -----------------------------

def init_raw_params(key, length, embedding_size):
    """PyTorch-equivalent raw parameters (weights as (out, in), like nn.Linear)."""
    d = length * embedding_size
    ks = iter(jax.random.split(key, 40))

    def linear(out_f, in_f):
        bound = 1.0 / (in_f ** 0.5)
        w = jax.random.uniform(next(ks), (out_f, in_f), jnp.float32, -bound, bound)
        bvec = jax.random.uniform(next(ks), (out_f,), jnp.float32, -bound, bound)
        return w, bvec

    # nn.Embedding weight ~ N(0, 1), flattened exactly as the PyTorch .view(-1)
    emb_w = jax.random.normal(next(ks), (length, embedding_size), jnp.float32)
    emb_flat = emb_w.reshape(-1)                                          # (D,)

    # selector matrix trans[i, i*E + j] = 1, as built by the PyTorch double loop
    cols = jnp.arange(d)
    trans = (cols[None, :] // embedding_size
             == jnp.arange(length)[:, None]).astype(jnp.float32)          # (L, D)

    def mha():
        wq, bq = linear(d, d)
        wk, bk = linear(d, d)
        wv, bv = linear(d, d)
        wa, ba = linear(d, d)
        gamma = jnp.ones((d,), jnp.float32)                                # nn.LayerNorm defaults
        beta = jnp.zeros((d,), jnp.float32)
        return (wq, bq, wk, bk, wv, bv, wa, ba, gamma, beta)

    att1 = mha()
    att2 = mha()
    wf, bf = linear(1, d)
    return {"emb_flat": emb_flat, "trans": trans,
            "att1": att1, "att2": att2, "wf": wf, "bf": bf}


def pack_kernel_params(raw):
    """Pre-associate all static weight algebra; pack small vectors into one dense operand."""
    d = raw["trans"].shape[1]
    trans_scaled = raw["trans"] * raw["emb_flat"][None, :]                # embedding folded in (L, D)

    def blk(p):
        _wq, _bq, _wk, _bk, wv, bv, wa, ba, gamma, beta = p
        w_eff = jnp.eye(d, dtype=jnp.float32) + wv.T @ wa.T               # x + attn(x) as one matmul
        c_eff = bv @ wa.T + ba                                            # (D,)
        return w_eff, c_eff, gamma, beta

    w1, c1, g1, be1 = blk(raw["att1"])
    w2, c2, g2, be2 = blk(raw["att2"])

    # Fold embedding selector + block-1 weight:   T_eff = trans_scaled @ W1         (L, D)
    t_eff = trans_scaled @ w1
    # Fold LN1 affine into block 2:               W2' = diag(g1) @ W2,  c2' = be1 @ W2 + c2
    w2p = g1[:, None] * w2
    c2p = be1 @ w2 + c2
    # Fold LN2 affine into linear_final:          wf' = g2 * wf,  bias' = be2 · wf + bf
    wf_row = raw["wf"].reshape(-1)
    wfp = g2 * wf_row
    bias = jnp.dot(be2, wf_row) + raw["bf"][0]

    te_t = t_eff.T.astype(jnp.float32)                                    # (D, L)
    w2_t = w2p.T.astype(jnp.float32)                                      # (D, D)
    vcols = jnp.stack(
        [c1, c2p, wfp, jnp.full((d,), bias, jnp.float32)], axis=1
    ).astype(jnp.float32)                                                 # (D, 4)
    # TODO(synk): optionally pre-cast w2_t/n1 to bf16 if a bundle dump shows the DxD matmul binds.
    return te_t, w2_t, vcols


# ---------------- pure-JAX reference (PyTorch semantics, eval mode) ----------------

def reference_forward(inp, raw):
    b = inp.shape[0]
    x = (inp @ raw["trans"]) * raw["emb_flat"][None, :]                   # (B, D); seq_len == 1

    def mha(x, p):
        wq, bq, wk, bk, wv, bv, wa, ba, gamma, beta = p
        d = x.shape[-1]
        dph = d // NUM_HEADS
        q = x @ wq.T + bq
        k = x @ wk.T + bk
        v = x @ wv.T + bv
        qh = q.reshape(b * NUM_HEADS, 1, dph)
        kh = k.reshape(b * NUM_HEADS, 1, dph)
        vh = v.reshape(b * NUM_HEADS, 1, dph)
        scale = (dph // NUM_HEADS) ** (-0.5) if (dph // NUM_HEADS) != 0 else 1.0
        att = jnp.einsum('ijk,ilk->ijl', qh, kh) * scale
        att = jax.nn.softmax(att, axis=2)                                 # == 1 (single key)
        ctx = jnp.einsum('ijl,ilk->ijk', att, vh).reshape(b, d)
        out = ctx @ wa.T + ba
        y = x + out
        mu = y.mean(-1, keepdims=True)
        var = ((y - mu) ** 2).mean(-1, keepdims=True)
        return (y - mu) / jnp.sqrt(var + LN_EPS) * gamma + beta

    x = mha(x, raw["att1"])
    x = mha(x, raw["att2"])
    return (x @ raw["wf"].T + raw["bf"]).reshape(b, 1, 1)


if __name__ == "__main__":
    length, embedding_size, batch = 8, 8, 4        # feature_dim D = 64
    key = jax.random.PRNGKey(0)
    pkey, xkey = jax.random.split(key)

    raw = init_raw_params(pkey, length, embedding_size)
    kparams = pack_kernel_params(raw)
    x = jax.random.normal(xkey, (batch, length), jnp.float32)

    out = embedding_attention_attention_forward(x, kparams)
    out = jax.block_until_ready(out)

    ref = reference_forward(x, raw)
    assert out.shape == (batch, 1, 1)
    if not jnp.allclose(out, ref, rtol=1e-3, atol=1e-3):
        raise AssertionError("Pallas kernel output does not match reference")
    print("KERNEL_OK")
</pallas_src>

<mosaic_0001>
module attributes {stable_mosaic.version = 11 : i64} {
  func.func @_model_kernel(%arg0: i32, %arg1: memref<128x8xf32, #tpu.memory_space<vmem>>, %arg2: memref<64x8xf32, #tpu.memory_space<vmem>>, %arg3: memref<64x64xf32, #tpu.memory_space<vmem>>, %arg4: memref<64x4xf32, #tpu.memory_space<vmem>>, %arg5: memref<1x128xf32, #tpu.memory_space<vmem>>) attributes {dimension_semantics = [#tpu.dimension_semantics<parallel>], iteration_bounds = array<i64: 1>, scalar_prefetch = 0 : i64, scratch_operands = 0 : i64, tpu.core_type = #tpu.core_type<tc>, window_params = [{transform_indices = @transform_0, window_bounds = array<i64: 128, 8>}, {pipeline_mode = #tpu.pipeline_mode<synchronous>, transform_indices = @transform_1, window_bounds = array<i64: 64, 8>}, {pipeline_mode = #tpu.pipeline_mode<synchronous>, transform_indices = @transform_2, window_bounds = array<i64: 64, 64>}, {pipeline_mode = #tpu.pipeline_mode<synchronous>, transform_indices = @transform_3, window_bounds = array<i64: 64, 4>}, {transform_indices = @transform_4, window_bounds = array<i64: 1, 128>}]} {
    %c0 = arith.constant 0 : index
    %c0_0 = arith.constant 0 : index
    %0 = vector.load %arg4[%c0, %c0_0] : memref<64x4xf32, #tpu.memory_space<vmem>>, vector<64x4xf32>
    %1 = vector.extract_strided_slice %0 {offsets = [0, 0], sizes = [64, 1], strides = [1, 1]} : vector<64x4xf32> to vector<64x1xf32>
    %2 = vector.extract_strided_slice %0 {offsets = [0, 1], sizes = [64, 1], strides = [1, 1]} : vector<64x4xf32> to vector<64x1xf32>
    %3 = vector.extract_strided_slice %0 {offsets = [0, 2], sizes = [64, 1], strides = [1, 1]} : vector<64x4xf32> to vector<64x1xf32>
    %4 = vector.extract_strided_slice %0 {offsets = [0, 3], sizes = [1, 1], strides = [1, 1]} : vector<64x4xf32> to vector<1x1xf32>
    %c0_1 = arith.constant 0 : index
    %c0_2 = arith.constant 0 : index
    %5 = vector.load %arg2[%c0_1, %c0_2] : memref<64x8xf32, #tpu.memory_space<vmem>>, vector<64x8xf32>
    %c0_3 = arith.constant 0 : index
    %c0_4 = arith.constant 0 : index
    %6 = vector.load %arg1[%c0_3, %c0_4] : memref<128x8xf32, #tpu.memory_space<vmem>>, vector<128x8xf32>
    %cst = arith.constant dense<0.000000e+00> : vector<64x128xf32>
    %7 = tpu.matmul %5, %6, %cst {dimension_numbers = #tpu.dot_dimension_numbers<[1], [1], [0], [0], [0, 0, 1, 0], [], []>} : vector<64x8xf32>, vector<128x8xf32>, vector<64x128xf32> -> vector<64x128xf32>
    %8 = vector.broadcast %1 : vector<64x1xf32> to vector<64x128xf32>
    %9 = arith.addf %7, %8 : vector<64x128xf32>
    %cst_5 = arith.constant dense<0.000000e+00> : vector<128xf32>
    %10 = vector.multi_reduction <add>, %9, %cst_5 [0] : vector<64x128xf32> to vector<128xf32>
    %11 = vector.shape_cast %10 : vector<128xf32> to vector<1x128xf32>
    %cst_6 = arith.constant 6.400000e+01 : f32
    %12 = vector.broadcast %cst_6 : f32 to vector<1x128xf32>
    %13 = arith.divf %11, %12 : vector<1x128xf32>
    %14 = vector.broadcast %13 : vector<1x128xf32> to vector<64x128xf32>
    %15 = arith.subf %9, %14 : vector<64x128xf32>
    %16 = arith.mulf %15, %15 : vector<64x128xf32>
    %cst_7 = arith.constant dense<0.000000e+00> : vector<128xf32>
    %17 = vector.multi_reduction <add>, %16, %cst_7 [0] : vector<64x128xf32> to vector<128xf32>
    %18 = vector.shape_cast %17 : vector<128xf32> to vector<1x128xf32>
    %cst_8 = arith.constant 6.400000e+01 : f32
    %19 = vector.broadcast %cst_8 : f32 to vector<1x128xf32>
    %20 = arith.divf %18, %19 : vector<1x128xf32>
    %21 = vector.broadcast %13 : vector<1x128xf32> to vector<64x128xf32>
    %22 = arith.subf %9, %21 : vector<64x128xf32>
    %cst_9 = arith.constant 9.99999974E-6 : f32
    %23 = vector.broadcast %cst_9 : f32 to vector<1x128xf32>
    %24 = arith.addf %20, %23 : vector<1x128xf32>
    %25 = math.rsqrt %24 : vector<1x128xf32>
    %26 = vector.broadcast %25 : vector<1x128xf32> to vector<64x128xf32>
    %27 = arith.mulf %22, %26 : vector<64x128xf32>
    %c0_10 = arith.constant 0 : index
    %c0_11 = arith.constant 0 : index
    %28 = vector.load %arg3[%c0_10, %c0_11] : memref<64x64xf32, #tpu.memory_space<vmem>>, vector<64x64xf32>
    %cst_12 = arith.constant dense<0.000000e+00> : vector<64x128xf32>
    %29 = tpu.matmul %28, %27, %cst_12 {dimension_numbers = #tpu.dot_dimension_numbers<[1], [0], [0], [1], [0, 0, 1, 1], [], []>} : vector<64x64xf32>, vector<64x128xf32>, vector<64x128xf32> -> vector<64x128xf32>
    %30 = vector.broadcast %2 : vector<64x1xf32> to vector<64x128xf32>
    %31 = arith.addf %29, %30 : vector<64x128xf32>
    %cst_13 = arith.constant dense<0.000000e+00> : vector<128xf32>
    %32 = vector.multi_reduction <add>, %31, %cst_13 [0] : vector<64x128xf32> to vector<128xf32>
    %33 = vector.shape_cast %32 : vector<128xf32> to vector<1x128xf32>
    %cst_14 = arith.constant 6.400000e+01 : f32
    %34 = vector.broadcast %cst_14 : f32 to vector<1x128xf32>
    %35 = arith.divf %33, %34 : vector<1x128xf32>
    %36 = vector.broadcast %35 : vector<1x128xf32> to vector<64x128xf32>
    %37 = arith.subf %31, %36 : vector<64x128xf32>
    %38 = arith.mulf %37, %37 : vector<64x128xf32>
    %cst_15 = arith.constant dense<0.000000e+00> : vector<128xf32>
    %39 = vector.multi_reduction <add>, %38, %cst_15 [0] : vector<64x128xf32> to vector<128xf32>
    %40 = vector.shape_cast %39 : vector<128xf32> to vector<1x128xf32>
    %cst_16 = arith.constant 6.400000e+01 : f32
    %41 = vector.broadcast %cst_16 : f32 to vector<1x128xf32>
    %42 = arith.divf %40, %41 : vector<1x128xf32>
    %43 = vector.broadcast %35 : vector<1x128xf32> to vector<64x128xf32>
    %44 = arith.subf %31, %43 : vector<64x128xf32>
    %cst_17 = arith.constant 9.99999974E-6 : f32
    %45 = vector.broadcast %cst_17 : f32 to vector<1x128xf32>
    %46 = arith.addf %42, %45 : vector<1x128xf32>
    %47 = math.rsqrt %46 : vector<1x128xf32>
    %48 = vector.broadcast %47 : vector<1x128xf32> to vector<64x128xf32>
    %49 = arith.mulf %44, %48 : vector<64x128xf32>
    %50 = vector.broadcast %3 : vector<64x1xf32> to vector<64x128xf32>
    %51 = arith.mulf %49, %50 : vector<64x128xf32>
    %cst_18 = arith.constant dense<0.000000e+00> : vector<128xf32>
    %52 = vector.multi_reduction <add>, %51, %cst_18 [0] : vector<64x128xf32> to vector<128xf32>
    %53 = vector.shape_cast %52 : vector<128xf32> to vector<1x128xf32>
    %54 = vector.broadcast %4 : vector<1x1xf32> to vector<1x128xf32>
    %55 = arith.addf %53, %54 : vector<1x128xf32>
    %c0_19 = arith.constant 0 : index
    %c0_20 = arith.constant 0 : index
    %56 = vector.load %arg5[%c0_19, %c0_20] : memref<1x128xf32, #tpu.memory_space<vmem>>, vector<1x128xf32>
    tpu.vector_store %arg5[%c0_19, %c0_20], %55 {strides = array<i32>} : memref<1x128xf32, #tpu.memory_space<vmem>>, vector<1x128xf32>,
    return
  }
  func.func @transform_0(%arg0: i32) -> (i32, i32) {
    %c0_i32 = arith.constant 0 : i32
    %c0_i32_0 = arith.constant 0 : i32
    return %arg0, %c0_i32 : i32, i32
  }
  func.func @transform_1(%arg0: i32) -> (i32, i32) {
    %c0_i32 = arith.constant 0 : i32
    %c0_i32_0 = arith.constant 0 : i32
    %c0_i32_1 = arith.constant 0 : i32
    return %c0_i32, %c0_i32_0 : i32, i32
  }
  func.func @transform_2(%arg0: i32) -> (i32, i32) {
    %c0_i32 = arith.constant 0 : i32
    %c0_i32_0 = arith.constant 0 : i32
    %c0_i32_1 = arith.constant 0 : i32
    return %c0_i32, %c0_i32_0 : i32, i32
  }
  func.func @transform_3(%arg0: i32) -> (i32, i32) {
    %c0_i32 = arith.constant 0 : i32
    %c0_i32_0 = arith.constant 0 : i32
    %c0_i32_1 = arith.constant 0 : i32
    return %c0_i32, %c0_i32_0 : i32, i32
  }
  func.func @transform_4(%arg0: i32) -> (i32, i32) {
    %c0_i32 = arith.constant 0 : i32
    %c0_i32_0 = arith.constant 0 : i32
    return %c0_i32, %arg0 : i32, i32
  }
}

</mosaic_0001>

<bundles_post_ra>
// kernel: tpu_custom_call.1
= control target key start
LH: loop header
LB: loop body
LE: loop exit
PB: predicated region body
PF: predicated region fallthrough
CT: control target
= control target key end

     0   :  { %vm90_vm0 = vcmask 64512   ;;  %v868_v6 = vmov 0   ;;  %s1125_s0 = inlined_call_operand.vmem [shape: f32[128,8], index: 0, kind: input, shape index: {}]   ;;  %s1126_s1 = inlined_call_operand.vmem [shape: f32[64,8], index: 1, kind: input, shape index: {}]   ;;  %s1127_s2 = inlined_call_operand.vmem [shape: f32[64,64], index: 2, kind: input, shape index: {}]   ;;  %s1128_s3 = inlined_call_operand.vmem [shape: f32[64,4], index: 3, kind: input, shape index: {}]   ;;  %s1129_s4 = inlined_call_operand.hbm [shape: f32[1,128], index: 4, kind: output, shape index: {}]  }
   0x1   :  { %v34_v0 = vld [vmem:[%s1125_s0] sm:$0xff]  ;;  %v35_v1 = vld [vmem:[%s1125_s0 + $0x8] sm:$0xff]  ;;  %v36_v2 = vld [vmem:[%s1125_s0 + $0x10] sm:$0xff]  ;;  %833 = vset.pattern.permute.xlu0 %v868_v6  ;;  %834 = vset.pattern.permute.xlu1 %v868_v6 }
   0x2   :  { %v764_v3 = vpack.c.bf16 %v35_v1, %v34_v0  ;;  %vm909_vm1 = vmpackc.low %vm90_vm0, %vm90_vm0  ;;  %v37_v5 = vld [vmem:[%s1125_s0 + $0x18] sm:$0xff]  ;;  %v26_v8 = vld [vmem:[%s1126_s1] sm:$0xff] }
   0x3   :  { %v770_v7 = vpack.c.bf16 %v37_v5, %v36_v2  ;;  %v38_v9 = vld [vmem:[%s1125_s0 + $0x20] sm:$0xff]  ;;  %v39_v10 = vld [vmem:[%s1125_s0 + $0x28] sm:$0xff]  ;;  %724 = vmatprep.mubr.msk.f32.mxu0 %vm90_vm0, %v26_v8  ;;  %v940_v12 = vld [vmem:[%s1128_s3 + $0x10] sm:$0xff] }
   0x4   :  { %766 = vmatprep.subr.msk.bf16.mxu0 %vm909_vm1, %v764_v3  ;;  %v935_v11 = vld [vmem:[%s1128_s3] sm:$0xff]  ;;  %v776_v13 = vpack.c.bf16 %v39_v10, %v38_v9  ;;  %62 = vperm.xlu1 %834, %v940_v12   ;;  %v947_v14 = vld [vmem:[%s1128_s3 + $0x8] sm:$0xff]  ;;  %v952_v15 = vld [vmem:[%s1128_s3 + $0x18] sm:$0xff] }
   0x5   :  { %769 = vmatpush3.bf16.xpose.msk.msra.mxu0 %vm909_vm1, %v764_v3  ;;  %52 = vperm.xlu0 %833, %v935_v11  }
   0x6   :  { %772 = vmatprep.subr.msk.bf16.mxu0 %vm909_vm1, %v770_v7 }
   0x7   :  { %9 = vsyncpa [#allocation3], 0  ;;  %v40_v16 = vld [vmem:[%s1125_s0 + $0x30] sm:$0xff]  ;;  %v41_v17 = vld [vmem:[%s1125_s0 + $0x38] sm:$0xff]  ;;  %vm363_vm2 = vcmask 523264   ;;  %v869_v43 = vmov 1  }
   0x8   :  { %67 = vperm.xlu1 %834, %v952_v15   ;;  %v969_v18 = vld [vmem:[%s1128_s3 + $0x20] sm:$0xff]  ;;  %v974_v19 = vld [vmem:[%s1128_s3 + $0x28] sm:$0xff]  ;;  %v782_v20 = vpack.c.bf16 %v41_v17, %v40_v16  ;;  %v981_v21 = vld [vmem:[%s1128_s3 + $0x30] sm:$0xff]  ;;  %v870_v50 = vmov 2   ;;  %v871_v8 = vmov 3  }
   0x9   :  { %57 = vperm.xlu0 %833, %v947_v14   ;;  %v986_v22 = vld [vmem:[%s1128_s3 + $0x38] sm:$0xff]  ;;  %v42_v23 = vld [vmem:[%s1125_s0 + $0x40] sm:$0xff]  ;;  %v43_v24 = vld [vmem:[%s1125_s0 + $0x48] sm:$0xff] }
   0xa   :  { %v788_v25 = vpack.c.bf16 %v43_v24, %v42_v23  ;;  %v44_v26 = vld [vmem:[%s1125_s0 + $0x50] sm:$0xff]  ;;  %v45_v27 = vld [vmem:[%s1125_s0 + $0x58] sm:$0xff]  ;;  %v46_v29 = vld [vmem:[%s1125_s0 + $0x60] sm:$0xff] }
   0xb   :  { %v794_v28 = vpack.c.bf16 %v45_v27, %v44_v26  ;;  %v47_v30 = vld [vmem:[%s1125_s0 + $0x68] sm:$0xff]  ;;  %v48_v32 = vld [vmem:[%s1125_s0 + $0x70] sm:$0xff]  ;;  %v49_v33 = vld [vmem:[%s1125_s0 + $0x78] sm:$0xff] }
   0xc   :  { %77 = vperm.xlu1 %834, %v974_v19   ;;  %v800_v31 = vpack.c.bf16 %v47_v30, %v46_v29  ;;  %v806_v34 = vpack.c.bf16 %v49_v33, %v48_v32  ;;  %v27_v35 = vld [vmem:[%s1126_s1 + $0x8] sm:$0xff]  ;;  %v28_v36 = vld [vmem:[%s1126_s1 + $0x10] sm:$0xff]  ;;  %v29_v37 = vld [vmem:[%s1126_s1 + $0x18] sm:$0xff] }
   0xd   :  { %775 = vmatpush3.bf16.xpose.msk.msra.mxu0 %vm909_vm1, %v770_v7  ;;  %72 = vperm.xlu0 %833, %v969_v18   ;;  %v30_v38 = vld [vmem:[%s1126_s1 + $0x20] sm:$0xff]  ;;  %v31_v39 = vld [vmem:[%s1126_s1 + $0x28] sm:$0xff]  ;;  %v32_v40 = vld [vmem:[%s1126_s1 + $0x30] sm:$0xff] }
   0xe   :  { %778 = vmatprep.subr.msk.bf16.mxu0 %vm909_vm1, %v776_v13  ;;  %v33_v41 = vld [vmem:[%s1126_s1 + $0x38] sm:$0xff]  ;;  %v323_v42 = vld [vmem:[%s1127_s2] sm:$0xff] }
   0xf   :  { %752 = vmatprep.mubr.msk.f32.mxu1 %vm363_vm2, %v323_v42 }
  0x10   :  { %87 = vperm.xlu1 %834, %v986_v22  }
  0x11   :  { %82 = vperm.xlu0 %833, %v981_v21  }
  0x14   :  { %836 = vset.pattern.permute.xlu1 %v869_v43 }
  0x15   :  { %781 = vmatpush3.bf16.xpose.msk.msra.mxu0 %vm909_vm1, %v776_v13  ;;  %835 = vset.pattern.permute.xlu0 %v869_v43 }
  0x16   :  { %784 = vmatprep.subr.msk.bf16.mxu0 %vm909_vm1, %v782_v20  ;;  %336 = vperm.xlu1 %836, %v947_v14  }
  0x17   :  { %332 = vperm.xlu0 %835, %v935_v11  }
  0x1a   :  { %340 = vperm.xlu1 %836, %v940_v12  }
  0x1b   :  { %344 = vperm.xlu0 %835, %v952_v15  }
  0x1d   :  { %787 = vmatpush3.bf16.xpose.msk.msra.mxu0 %vm909_vm1, %v782_v20 }
  0x1e   :  { %790 = vmatprep.subr.msk.bf16.mxu0 %vm909_vm1, %v788_v25  ;;  %348 = vperm.xlu1 %836, %v969_v18  }
  0x1f   :  { %352 = vperm.xlu0 %835, %v974_v19  }
  0x22   :  { %356 = vperm.xlu1 %836, %v981_v21  }
  0x23   :  { %360 = vperm.xlu0 %835, %v986_v22  }
  0x25   :  { %793 = vmatpush3.bf16.xpose.msk.msra.mxu0 %vm909_vm1, %v788_v25 }
  0x26   :  { %796 = vmatprep.subr.msk.bf16.mxu0 %vm909_vm1, %v794_v28  ;;  %837 = vset.pattern.permute.xlu1 %v870_v50 }
  0x27   :  { %838 = vset.pattern.permute.xlu0 %v870_v50  ;;  %548 = vperm.xlu1 %837, %v935_v11  }
  0x28   :  { %552 = vperm.xlu0 %838, %v947_v14  }
  0x2b   :  { %556 = vperm.xlu1 %837, %v940_v12  }
  0x2c   :  { %564 = vperm.xlu0 %838, %v969_v18  }
  0x2d   :  { %799 = vmatpush3.bf16.xpose.msk.msra.mxu0 %vm909_vm1, %v794_v28 }
  0x2e   :  { %802 = vmatprep.subr.msk.bf16.mxu0 %vm909_vm1, %v800_v31 }
  0x2f   :  { %560 = vperm.xlu1 %837, %v952_v15  }
  0x30   :  { %572 = vperm.xlu0 %838, %v981_v21  }
  0x33   :  { %568 = vperm.xlu1 %837, %v974_v19  }
  0x34   :  { %839 = vset.pattern.permute.xlu0 %v871_v8 }
  0x35   :  { %805 = vmatpush3.bf16.xpose.msk.msra.mxu0 %vm909_vm1, %v800_v31  ;;  %601 = vperm.xlu0 %839, %v935_v11  }
  0x36   :  { %808 = vmatprep.subr.msk.bf16.mxu0 %vm909_vm1, %v806_v34 }
  0x37   :  { %576 = vperm.xlu1 %837, %v986_v22  }
  0x3d   :  { %811 = vmatpush3.bf16.xpose.msk.msra.mxu0 %vm909_vm1, %v806_v34 }
  0x44   :  { %725 = vmatmul.mubr.msk.f32.vlgmr.msra.gmra.mrb[0].mxu0 %vm90_vm0, %v27_v35 }
  0x45   :  { %727 = vmatprep.mubr.msk.f32.mxu0 %vm90_vm0, %v28_v36 }
  0x48   :  { %728 = vmatmul.mubr.msk.f32.gmra.mrb[2].mxu0 %vm90_vm0, %v29_v37 }
  0x49   :  { %730 = vmatprep.mubr.msk.f32.mxu0 %vm90_vm0, %v30_v38 }
  0x4c   :  { %731 = vmatmul.mubr.msk.f32.gmra.mrb[4].mxu0 %vm90_vm0, %v31_v39 }
  0x4d   :  { %733 = vmatprep.mubr.msk.f32.mxu0 %vm90_vm0, %v32_v40 }
  0x50   :  { %734 = vmatmul.mubr.msk.f32.gmra.mrb[6].mxu0 %vm90_vm0, %v33_v41 }
  0x83   :  { %v63_v45 = vpop.permute.xlu1 %62 }
  0x84   :  { %v53_v44 = vpop.permute.xlu0 %52 }
  0x87   :  { %v68_v52 = vpop.permute.xlu1 %67 }
  0x88   :  { %v58_v46 = vpop.permute.xlu0 %57 }
  0x8b   :  { %v78_v61 = vpop.permute.xlu1 %77 }
  0x8c   :  { %v73_v57 = vpop.permute.xlu0 %72 }
  0x8f   :  { %v88_v9 = vpop.permute.xlu1 %87 }
  0x90   :  { %v83_v4 = vpop.permute.xlu0 %82 }
  0x96   :  { %v333_v8 = vpop.permute.xlu0 %332 }
 0x117   :  { %v726_v47 = vpop.f32.mrb[0].mxu0 }
 0x118   :  { %v235_v48 = vadd.f32 %v726_v47, %v58_v46  ;;  %v229_v49 = vpop.f32.mrb[1].mxu0 }
 0x119   :  { %v230_v51 = vadd.f32 %v229_v49, %v53_v44 }
 0x11b   :  { %v268_v53 = vadd.f32 %v235_v48, %v230_v51  ;;  %v729_v54 = vpop.f32.mrb[2].mxu0 }
 0x11c   :  { %v239_v55 = vpop.f32.mrb[3].mxu0  ;;  %v245_v58 = vadd.f32 %v729_v54, %v68_v52 }
 0x11d   :  { %v240_v56 = vadd.f32 %v239_v55, %v63_v45 }
 0x11f   :  { %v269_v59 = vadd.f32 %v268_v53, %v240_v56  ;;  %v732_v60 = vpop.f32.mrb[4].mxu0 }
 0x120   :  { %v249_v62 = vpop.f32.mrb[5].mxu0  ;;  %v255_v1 = vadd.f32 %v732_v60, %v78_v61 }
 0x121   :  { %v250_v63 = vadd.f32 %v249_v62, %v73_v57  ;;  %v270_v0 = vadd.f32 %v269_v59, %v245_v58 }
 0x123   :  { %v271_v2 = vadd.f32 %v270_v0, %v250_v63  ;;  %v735_v3 = vpop.f32.mrb[6].mxu0  ;;  %v324_v0 = vld [vmem:[%s1127_s2 + $0x8] sm:$0xff] }
 0x124   :  { %v259_v5 = vpop.f32.mrb[7].mxu0  ;;  %v265_v10 = vadd.f32 %v735_v3, %v88_v9  ;;  %v327_v3 = vld [vmem:[%s1127_s2 + $0x20] sm:$0xff] }
 0x125   :  { %v260_v6 = vadd.f32 %v259_v5, %v83_v4  ;;  %v272_v7 = vadd.f32 %v271_v2, %v255_v1  ;;  %v326_v2 = vld [vmem:[%s1127_s2 + $0x18] sm:$0xff]  ;;  %v328_v4 = vld [vmem:[%s1127_s2 + $0x28] sm:$0xff]  ;;  %v329_v5 = vld [vmem:[%s1127_s2 + $0x30] sm:$0xff] }
 0x127   :  { %v273_v12 = vadd.f32 %v272_v7, %v260_v6  ;;  %v337_v7 = vpop.permute.xlu1 %336 }
 0x129   :  { %v274_v13 = vadd.f32 %v273_v12, %v265_v10 }
 0x12b   :  { %v275_v14 = vrot.slane %v274_v13, 4 }
 0x12d   :  { %v276_v15 = vadd.f32 %v275_v14, %v274_v13 }
 0x12f   :  { %v277_v16 = vrot.slane %v276_v15, 2 }
 0x131   :  { %v278_v17 = vadd.f32 %v277_v16, %v276_v15  ;;  %v345_v15 = vpop.permute.xlu0 %344 }
 0x133   :  { %v279_v18 = vrot.slane %v278_v17, 1 }
 0x135   :  { %v280_v20 = vadd.f32 %v279_v18, %v278_v17 }
 0x137   :  { %v282_v21 = vmul.f32 0.015625, %v280_v20 }
 0x139   :  { %v283_v23 = vsub.f32 %v230_v51, %v282_v21  ;;  %v284_v24 = vsub.f32 %v235_v48, %v282_v21  ;;  %v285_v19 = vsub.f32 %v240_v56, %v282_v21  ;;  %v286_v25 = vsub.f32 %v245_v58, %v282_v21 }
 0x13a   :  { %v287_v26 = vsub.f32 %v250_v63, %v282_v21  ;;  %v288_v27 = vsub.f32 %v255_v1, %v282_v21  ;;  %v289_v28 = vsub.f32 %v260_v6, %v282_v21  ;;  %v290_v11 = vsub.f32 %v265_v10, %v282_v21  ;;  %v325_v1 = vld [vmem:[%s1127_s2 + $0x10] sm:$0xff]  ;;  %v330_v6 = vld [vmem:[%s1127_s2 + $0x38] sm:$0xff]  ;;  %v341_v10 = vpop.permute.xlu1 %340  ;;  %s872_s2 = smov [#allocation2]  }
 0x13b   :  { %v291_v29 = vmul.f32 %v283_v23, %v283_v23  ;;  %v292_v30 = vmul.f32 %v284_v24, %v284_v24  ;;  %v293_v31 = vmul.f32 %v285_v19, %v285_v19  ;;  %v294_v22 = vmul.f32 %v286_v25, %v286_v25  ;;  %s612_s13 = sshll.u32 %s872_s2, 4  ;;  %s613_s13 = int_to_ptr.vmem [resolvable:$true] %s612_s13 }
 0x13c   :  { %v295_v34 = vmul.f32 %v287_v26, %v287_v26  ;;  %v296_v36 = vmul.f32 %v288_v27, %v288_v27  ;;  %v297_v38 = vmul.f32 %v289_v28, %v289_v28  ;;  %v298_v40 = vmul.f32 %v290_v11, %v290_v11  ;;  %s844_s14 = scalar_lea.vmem %s613_s13, 16  ;;  %s848_s15 = scalar_lea.vmem %s613_s13, 32 }
 0x13d   :  { %v299_v32 = vadd.f32 %v292_v30, %v291_v29  ;;  %p845_p0 = scmp.ne.s32.totalorder %s613_s13, %s844_s14  ;;  %p849_p1 = scmp.lt.s32.totalorder %s613_s13, %s613_s13 }
 0x13e   :  { %v349_v21 = vpop.permute.xlu1 %348  ;;  %p850_p2 = scmp.lt.s32.totalorder %s848_s15, %s844_s14 }
 0x13f   :  { %v300_v33 = vadd.f32 %v299_v32, %v293_v31 }
 0x140   :  { %p851_p3 = por %p850_p2, %p849_p1 }
 0x141   :  { %v301_v35 = vadd.f32 %v300_v33, %v294_v22 }
 0x142   :  { %v357_v31 = vpop.permute.xlu1 %356  ;;  %p852_p4 = pnand %p851_p3, %p845_p0 }
 0x143   :  { %v302_v37 = vadd.f32 %v301_v35, %v295_v34 }
 0x145   :  { %v303_v39 = vadd.f32 %v302_v37, %v296_v36 }
 0x147   :  { %v304_v41 = vadd.f32 %v303_v39, %v297_v38 }
 0x149   :  { %v305_v42 = vadd.f32 %v304_v41, %v298_v40 }
 0x14b   :  { %v306_v43 = vrot.slane %v305_v42, 4 }
 0x14d   :  { %v307_v44 = vadd.f32 %v306_v43, %v305_v42 }
 0x14f   :  { %v308_v45 = vrot.slane %v307_v44, 2 }
 0x151   :  { %v309_v46 = vadd.f32 %v308_v45, %v307_v44 }
 0x153   :  { %v310_v47 = vrot.slane %v309_v46, 1 }
 0x155   :  { %v311_v48 = vadd.f32 %v310_v47, %v309_v46 }
 0x157   :  { %v312_v49 = vmul.f32 0.015625, %v311_v48 }
 0x159   :  { %v313_v50 = vadd.f32 1e-05, %v312_v49 }
 0x15b   :  { %840 = vrsqrt.f32 %v313_v50 }
 0x165   :  { %v841_v51 = vpop.eup %840 }
 0x166   :  { %v321_v52 = vmul.f32 %v841_v51, %v289_v28  ;;  %v315_v53 = vmul.f32 %v841_v51, %v283_v23  ;;  %v316_v54 = vmul.f32 %v841_v51, %v284_v24  ;;  %v317_v55 = vmul.f32 %v841_v51, %v285_v19 }
 0x167   :  { %v318_v56 = vmul.f32 %v841_v51, %v286_v25  ;;  %v319_v57 = vmul.f32 %v841_v51, %v287_v26  ;;  %v320_v58 = vmul.f32 %v841_v51, %v288_v27  ;;  %v322_v59 = vmul.f32 %v841_v51, %v290_v11  ;;  %v353_v25 = vpop.permute.xlu0 %352 }
 0x168   :  { %v812_v60 = vpack.c.bf16 %v316_v54, %v315_v53 }
 0x169   :  { %v816_v61 = vpack.c.bf16 %v318_v56, %v317_v55  ;;  %v820_v62 = vpack.c.bf16 %v320_v58, %v319_v57  ;;  %v824_v63 = vpack.c.bf16 %v322_v59, %v321_v52 }
 0x16a   :  { %813 = vmatprep.subr.bf16.mxu1 %v812_v60 }
 0x16b   :  { %815 = vmatpush3.bf16.msra.mxu1 %v812_v60  ;;  %v361_v34 = vpop.permute.xlu0 %360 }
 0x16c   :  { %817 = vmatprep.subr.bf16.mxu1 %v816_v61 }
 0x16f   :  { %819 = vmatpush3.bf16.msra.mxu1 %v816_v61 }
 0x170   :  { %821 = vmatprep.subr.bf16.mxu1 %v820_v62 }
 0x173   :  { %823 = vmatpush3.bf16.msra.mxu1 %v820_v62 }
 0x174   :  { %825 = vmatprep.subr.bf16.mxu1 %v824_v63 }
 0x177   :  { %827 = vmatpush3.bf16.msra.mxu1 %v824_v63 }
 0x17a   :  { %753 = vmatmul.mubr.msk.f32.vlgmr.msra.gmra.mrb[0].mxu1 %vm363_vm2, %v324_v0 }
 0x17b   :  { %755 = vmatprep.mubr.msk.f32.mxu1 %vm363_vm2, %v325_v1 }
 0x17e   :  { %756 = vmatmul.mubr.msk.f32.gmra.mrb[2].mxu1 %vm363_vm2, %v326_v2 }
 0x17f   :  { %758 = vmatprep.mubr.msk.f32.mxu1 %vm363_vm2, %v327_v3 }
 0x182   :  { %759 = vmatmul.mubr.msk.f32.gmra.mrb[4].mxu1 %vm363_vm2, %v328_v4 }
 0x183   :  { %761 = vmatprep.mubr.msk.f32.mxu1 %vm363_vm2, %v329_v5 }
 0x186   :  { %762 = vmatmul.mubr.msk.f32.gmra.mrb[6].mxu1 %vm363_vm2, %v330_v6 }
 0x24d   :  { %v754_v9 = vpop.f32.mrb[0].mxu1 }
 0x24e   :  { %v460_v12 = vadd.f32 %v754_v9, %v337_v7  ;;  %v454_v13 = vpop.f32.mrb[1].mxu1 }
 0x24f   :  { %v455_v14 = vadd.f32 %v454_v13, %v333_v8  ;;  %v549_v13 = vpop.permute.xlu1 %548 }
 0x251   :  { %v493_v16 = vadd.f32 %v460_v12, %v455_v14  ;;  %v757_v17 = vpop.f32.mrb[2].mxu1 }
 0x252   :  { %v464_v18 = vpop.f32.mrb[3].mxu1  ;;  %v470_v23 = vadd.f32 %v757_v17, %v345_v15  ;;  %v553_v15 = vpop.permute.xlu0 %552 }
 0x253   :  { %v465_v20 = vadd.f32 %v464_v18, %v341_v10 }
 0x255   :  { %v494_v24 = vadd.f32 %v493_v16, %v465_v20  ;;  %v760_v19 = vpop.f32.mrb[4].mxu1 }
 0x256   :  { %v474_v26 = vpop.f32.mrb[5].mxu1  ;;  %v480_v11 = vadd.f32 %v760_v19, %v353_v25 }
 0x257   :  { %v475_v27 = vadd.f32 %v474_v26, %v349_v21  ;;  %v495_v28 = vadd.f32 %v494_v24, %v470_v23 }
 0x259   :  { %v496_v29 = vadd.f32 %v495_v28, %v475_v27  ;;  %v763_v30 = vpop.f32.mrb[6].mxu1 }
 0x25a   :  { %v484_v32 = vpop.f32.mrb[7].mxu1  ;;  %v490_v35 = vadd.f32 %v763_v30, %v361_v34 }
 0x25b   :  { %v485_v22 = vadd.f32 %v484_v32, %v357_v31  ;;  %v497_v33 = vadd.f32 %v496_v29, %v480_v11 }
 0x25d   :  { %v498_v36 = vadd.f32 %v497_v33, %v485_v22 }
 0x25f   :  { %v499_v37 = vadd.f32 %v498_v36, %v490_v35 }
 0x261   :  { %v500_v38 = vrot.slane %v499_v37, 4 }
 0x263   :  { %v501_v39 = vadd.f32 %v500_v38, %v499_v37 }
 0x265   :  { %v502_v40 = vrot.slane %v501_v39, 2 }
 0x267   :  { %v503_v41 = vadd.f32 %v502_v40, %v501_v39 }
 0x269   :  { %v504_v42 = vrot.slane %v503_v41, 1 }
 0x26b   :  { %v505_v43 = vadd.f32 %v504_v42, %v503_v41 }
 0x26d   :  { %v506_v44 = vmul.f32 0.015625, %v505_v43 }
 0x26f   :  { %v509_v45 = vsub.f32 %v465_v20, %v506_v44  ;;  %v510_v46 = vsub.f32 %v470_v23, %v506_v44  ;;  %v512_v47 = vsub.f32 %v480_v11, %v506_v44  ;;  %v513_v48 = vsub.f32 %v485_v22, %v506_v44  ;;  %v565_v11 = vpop.permute.xlu0 %564 }
 0x270   :  { %v514_v49 = vsub.f32 %v490_v35, %v506_v44  ;;  %v507_v50 = vsub.f32 %v455_v14, %v506_v44  ;;  %v508_v51 = vsub.f32 %v460_v12, %v506_v44  ;;  %v511_v52 = vsub.f32 %v475_v27, %v506_v44  ;;  %v557_v14 = vpop.permute.xlu1 %556 }
 0x271   :  { %v517_v55 = vmul.f32 %v509_v45, %v509_v45  ;;  %v518_v57 = vmul.f32 %v510_v46, %v510_v46  ;;  %v520_v61 = vmul.f32 %v512_v47, %v512_v47  ;;  %v521_v63 = vmul.f32 %v513_v48, %v513_v48 }
 0x272   :  { %v515_v53 = vmul.f32 %v507_v50, %v507_v50  ;;  %v516_v54 = vmul.f32 %v508_v51, %v508_v51  ;;  %v519_v59 = vmul.f32 %v511_v52, %v511_v52  ;;  %v522_v1 = vmul.f32 %v514_v49, %v514_v49 }
 0x273   :  { %v573_v35 = vpop.permute.xlu0 %572 }
 0x274   :  { %v523_v56 = vadd.f32 %v516_v54, %v515_v53  ;;  %v561_v27 = vpop.permute.xlu1 %560 }
 0x276   :  { %v524_v58 = vadd.f32 %v523_v56, %v517_v55 }
 0x278   :  { %v525_v60 = vadd.f32 %v524_v58, %v518_v57  ;;  %v569_v22 = vpop.permute.xlu1 %568 }
 0x27a   :  { %v526_v62 = vadd.f32 %v525_v60, %v519_v59 }
 0x27c   :  { %v527_v0 = vadd.f32 %v526_v62, %v520_v61  ;;  %v577_v40 = vpop.permute.xlu1 %576 }
 0x27e   :  { %v528_v2 = vadd.f32 %v527_v0, %v521_v63 }
 0x280   :  { %v529_v3 = vadd.f32 %v528_v2, %v522_v1 }
 0x282   :  { %v530_v4 = vrot.slane %v529_v3, 4 }
 0x284   :  { %v531_v5 = vadd.f32 %v530_v4, %v529_v3 }
 0x286   :  { %v532_v6 = vrot.slane %v531_v5, 2 }
 0x288   :  { %v533_v7 = vadd.f32 %v532_v6, %v531_v5 }
 0x28a   :  { %v534_v8 = vrot.slane %v533_v7, 1 }
 0x28c   :  { %v535_v9 = vadd.f32 %v534_v8, %v533_v7 }
 0x28e   :  { %v536_v10 = vmul.f32 0.015625, %v535_v9 }
 0x290   :  { %v537_v12 = vadd.f32 1e-05, %v536_v10 }
 0x292   :  { %842 = vrsqrt.f32 %v537_v12 }
 0x29c   :  { %v843_v16 = vpop.eup %842 }
 0x29d   :  { %v539_v17 = vmul.f32 %v843_v16, %v507_v50  ;;  %v541_v18 = vmul.f32 %v843_v16, %v509_v45  ;;  %v542_v20 = vmul.f32 %v843_v16, %v510_v46  ;;  %v544_v21 = vmul.f32 %v843_v16, %v512_v47 }
 0x29e   :  { %v540_v23 = vmul.f32 %v843_v16, %v508_v51  ;;  %v546_v24 = vmul.f32 %v843_v16, %v514_v49  ;;  %v543_v19 = vmul.f32 %v843_v16, %v511_v52  ;;  %v545_v25 = vmul.f32 %v843_v16, %v513_v48  ;;  %v602_v49 = vpop.permute.xlu0 %601 }
 0x29f   :  { %v579_v26 = vmul.f32 %v549_v13, %v539_v17  ;;  %v581_v29 = vmul.f32 %v557_v14, %v541_v18  ;;  %v582_v31 = vmul.f32 %v561_v27, %v542_v20  ;;  %v584_v36 = vmul.f32 %v569_v22, %v544_v21 }
 0x2a0   :  { %v580_v28 = vmul.f32 %v553_v15, %v540_v23  ;;  %v583_v34 = vmul.f32 %v565_v11, %v543_v19  ;;  %v585_v39 = vmul.f32 %v573_v35, %v545_v25  ;;  %v586_v41 = vmul.f32 %v577_v40, %v546_v24 }
 0x2a2   :  { %v587_v30 = vadd.f32 %v580_v28, %v579_v26 }
 0x2a4   :  { %v588_v32 = vadd.f32 %v587_v30, %v581_v29 }
 0x2a6   :  { %v589_v33 = vadd.f32 %v588_v32, %v582_v31 }
 0x2a8   :  { %v590_v37 = vadd.f32 %v589_v33, %v583_v34 }
 0x2aa   :  { %v591_v38 = vadd.f32 %v590_v37, %v584_v36 }
 0x2ac   :  { %v592_v42 = vadd.f32 %v591_v38, %v585_v39 }
 0x2ae   :  { %v593_v43 = vadd.f32 %v592_v42, %v586_v41 }
 0x2b0   :  { %v594_v44 = vrot.slane %v593_v43, 4 }
 0x2b2   :  { %v595_v45 = vadd.f32 %v594_v44, %v593_v43 }
 0x2b4   :  { %v596_v46 = vrot.slane %v595_v45, 2 }
 0x2b6   :  { %v597_v47 = vadd.f32 %v596_v46, %v595_v45 }
 0x2b8   :  { %v598_v48 = vrot.slane %v597_v47, 1 }
 0x2ba   :  { %v599_v50 = vadd.f32 %v598_v48, %v597_v47 }
 0x2bc   :  { %v604_v51 = vadd.f32 %v602_v49, %v599_v50 }
 0x2be   :  { %605 = vst [vmem:[#allocation2] sm:$0x1] %v604_v51 }
 0x2bf   :  { %855 = shalt.err (!%p852_p4)
}
 0x2c0   :  { %s856_s17 = scalar_lea.hbm %s1129_s4, 16 }
 0x2c1   :  { %p857_p5 = scmp.ne.s32.totalorder %s1129_s4, %s856_s17  ;;  %p860_p6 = scmp.lt.u32.totalorder %s856_s17, %s1129_s4 }
 0x2c3   :  { %p862_p7 = pnand %p860_p6, %p857_p5 }
 0x2c5   :  { %865 = shalt.err (!%p862_p7)
}
 0x2c6   :  { %615 = dma.vmem_to_hbm [thread:$0]  %s613_s13, 16, %s1129_s4, [#allocation3]  }
 0x2c7   :  { %866 = dma.done.wait [#allocation3], 16  }
 0x2c8   :  { %867 = vsyncadd [#allocation3], 4294967280 }
 0x2c9   :  { %619 = vsyncpa [#allocation3], 1 }

</bundles_post_ra>
